<compile_context>
chip_gen: v6e
topology: v6e:2x2x1
jax: 0.10.0
libtpu: 0.0.40
codegen_flags: <defaults>
</compile_context>

<pallas_src>
import math

import numpy as np

import jax
import jax.numpy as jnp
from jax.experimental import pallas as pl
from jax.experimental.pallas import tpu as pltpu


def _round_up(x: int, m: int) -> int:
    return -(-x // m) * m


# --------------------------------------------------------------------------
# Kernels: y[i] = sum_k x[i,k] @ w[k] (+ bias), f32 accumulator across K steps.
# --------------------------------------------------------------------------
def _mha_linear_bias_kernel(x_ref, w_ref, b_ref, o_ref, acc_ref):
    @pl.when(pl.program_id(1) == 0)
    def _init():
        acc_ref[...] = jnp.zeros_like(acc_ref)

    acc_ref[...] += jnp.dot(x_ref[...], w_ref[...],
                            preferred_element_type=jnp.float32)

    @pl.when(pl.program_id(1) == pl.num_programs(1) - 1)
    def _finalize():
        o_ref[...] = (acc_ref[...] + b_ref[...].astype(jnp.float32)).astype(o_ref.dtype)


def _mha_linear_kernel(x_ref, w_ref, o_ref, acc_ref):
    @pl.when(pl.program_id(1) == 0)
    def _init():
        acc_ref[...] = jnp.zeros_like(acc_ref)

    acc_ref[...] += jnp.dot(x_ref[...], w_ref[...],
                            preferred_element_type=jnp.float32)

    @pl.when(pl.program_id(1) == pl.num_programs(1) - 1)
    def _finalize():
        o_ref[...] = acc_ref[...].astype(o_ref.dtype)


# --------------------------------------------------------------------------
# VMEM budgeting & tile selection
# --------------------------------------------------------------------------
def _vmem_budget():
    """(compiler scoped-VMEM limit to request, tile-picker target) in bytes."""
    cap = 64 << 20  # conservative fallback = v7x per-TensorCore VMEM
    try:
        info = pltpu.get_tpu_info()
        cap = int(getattr(info, "vmem_capacity_bytes", cap)) or cap
    except Exception:
        pass
    limit = min(int(cap * 0.8), 100 << 20)   # ~100 MiB on v5e/v6e, ~51 MiB on v7x
    budget = int(limit * 0.85)               # headroom for compiler-internal scratch
    return limit, budget


def _choose_tiles(m, d_model, n_pad, x_item, w_item, out_item, budget):
    """Pick (tm, tk, k_steps, k_pad) whose VMEM footprint fits `budget`."""
    m8 = _round_up(max(m, 1), 8)

    def footprint(tm, tk, k_steps):
        x_buf = 2                                 # streamed x tile, double-buffered
        w_buf = 1 if k_steps == 1 else 2          # grid-invariant -> single buffer
        return (x_buf * tm * tk * x_item
                + w_buf * tk * n_pad * w_item
                + 2 * tm * n_pad * out_item       # double-buffered output tile
                + tm * n_pad * 4                  # f32 accumulator scratch
                + tm * n_pad * 4                  # bias-add / cast staging headroom
                + 2 * n_pad * max(w_item, 4))     # bias block

    # Row-tile candidates: 256-multiples first (v6e/v7x MXU depth); 128/64 only
    # as a VMEM fallback.  Tiny M just uses one full-M tile.
    if m8 >= 256:
        tm_cands = [t for t in (2048, 1536, 1024, 768, 512, 256, 128, 64) if t <= m8]
    else:
        tm_cands = [m8]

    # 1) Prefer a single full-K block: weight fully VMEM-resident, one K step.
    for tm in tm_cands:
        if footprint(tm, d_model, 1) <= budget:
            return tm, d_model, 1, d_model

    # 2) Tile K.  Prefer tk that divides d_model (avoids zero-padding x/weight).
    tk_cands = [t for t in (2048, 1024, 512, 256, 128) if t < d_model]
    for exact in (True, False):
        for tm in tm_cands:
            for tk in tk_cands:
                if exact and d_model % tk != 0:
                    continue
                k_pad = _round_up(d_model, tk)
                if footprint(tm, tk, k_pad // tk) <= budget:
                    return tm, tk, k_pad // tk, k_pad

    # 3) Last resort: smallest tiles (only reachable for extreme widths).
    tm = tm_cands[-1]
    tk = d_model if d_model <= 128 else 128
    k_pad = _round_up(d_model, tk)
    return tm, tk, max(1, k_pad // tk), k_pad


# --------------------------------------------------------------------------
# Parameter packing (hoist out of the per-call hot path)
# --------------------------------------------------------------------------
def pack_mha_params(weight, bias):
    """One-time packing: PyTorch [out_features, d_model] weight -> transposed
    [d_model, n_pad] (projection width padded to a 128-lane multiple), bias ->
    [1, n_pad].  Returns (w_t, bias2d_or_None, out_features)."""
    out_features, d_model = weight.shape
    n_pad = _round_up(out_features, 128)
    w_t = jnp.transpose(weight)                              # [d_model, out_features]
    if n_pad != out_features:
        w_t = jnp.pad(w_t, ((0, 0), (0, n_pad - out_features)))
    b2d = None
    if bias is not None:
        b = bias if n_pad == out_features else jnp.pad(bias, (0, n_pad - out_features))
        b2d = b.reshape(1, n_pad)
    return w_t, b2d, out_features


# --------------------------------------------------------------------------
# Pallas linear (x @ w_t + b) on packed params
# --------------------------------------------------------------------------
def mha_linear_packed(x, w_t, b2d, out_features, *, tile_override=None):
    """y = x @ w_t (+ bias), returns [..., out_features].  `w_t` is the packed
    [d_model, n_pad] weight from pack_mha_params."""
    head_shape = x.shape[:-1]
    d_model = x.shape[-1]
    k_dim, n_pad = w_t.shape
    assert k_dim == d_model, (k_dim, d_model)

    m = 1
    for s in head_shape:
        m *= int(s)
    x2d = x.reshape(m, d_model)

    x_item = jnp.dtype(x.dtype).itemsize
    w_item = jnp.dtype(w_t.dtype).itemsize
    out_item = x_item
    vmem_limit, budget = _vmem_budget()

    if tile_override is not None:
        tm, tk = tile_override
        k_pad = _round_up(d_model, tk)
        k_steps = k_pad // tk
    else:
        tm, tk, k_steps, k_pad = _choose_tiles(
            m, d_model, n_pad, x_item, w_item, out_item, budget)
        # Split a single full-M tile in two when each half still fills the MXU,
        # so the "parallel" M axis gives v7x's second TensorCore work.
        m8 = _round_up(max(m, 1), 8)
        if pl.cdiv(m, tm) == 1 and m8 >= 512:
            tm = _round_up(m8 // 2, 256)

    # Rare path: K tiled with a non-divisor tile -> zero-pad the contraction
    # dim (zeros contribute nothing to the f32 accumulation).
    if k_pad != d_model:
        x2d = jnp.pad(x2d, ((0, 0), (0, k_pad - d_model)))
        w_t = jnp.pad(w_t, ((0, k_pad - d_model), (0, 0)))

    grid = (pl.cdiv(m, tm), k_steps)

    # x is the only streamed input; depth-2 pipelining hides its DMA once the
    # MXU time dominates.  Raise to pl.Buffered(3) only if a trace shows
    # exposed DMA for narrow projections.
    x_spec = pl.BlockSpec((tm, tk), lambda i, k: (i, k))
    if k_steps == 1:
        # Weight block is identical for every grid step -> single buffer.
        w_spec = pl.BlockSpec((tk, n_pad), lambda i, k: (k, 0),
                              pipeline_mode=pl.Buffered(1))
    else:
        w_spec = pl.BlockSpec((tk, n_pad), lambda i, k: (k, 0))
    o_spec = pl.BlockSpec((tm, n_pad), lambda i, k: (i, 0))
    out_shape = jax.ShapeDtypeStruct((m, n_pad), x.dtype)
    scratch = [pltpu.VMEM((tm, n_pad), jnp.float32)]

    cost = pl.CostEstimate(
        flops=2 * m * k_pad * n_pad,
        transcendentals=0,
        bytes_accessed=(m * k_pad * x_item + k_pad * n_pad * w_item
                        + m * n_pad * out_item + n_pad * 4),
    )
    cparams = pltpu.CompilerParams(
        dimension_semantics=("parallel", "arbitrary"),
        vmem_limit_bytes=vmem_limit,
    )

    if b2d is not None:
        b_spec = pl.BlockSpec((1, n_pad), lambda i, k: (0, 0),
                              pipeline_mode=pl.Buffered(1))
        y = pl.pallas_call(
            _mha_linear_bias_kernel,
            out_shape=out_shape,
            grid_spec=pltpu.PrefetchScalarGridSpec(
                num_scalar_prefetch=0,
                grid=grid,
                in_specs=[x_spec, w_spec, b_spec],
                out_specs=o_spec,
                scratch_shapes=scratch,
            ),
            compiler_params=cparams,
            cost_estimate=cost,
        )(x2d, w_t, b2d)
    else:
        y = pl.pallas_call(
            _mha_linear_kernel,
            out_shape=out_shape,
            grid_spec=pltpu.PrefetchScalarGridSpec(
                num_scalar_prefetch=0,
                grid=grid,
                in_specs=[x_spec, w_spec],
                out_specs=o_spec,
                scratch_shapes=scratch,
            ),
            compiler_params=cparams,
            cost_estimate=cost,
        )(x2d, w_t)

    if n_pad != out_features:
        # TODO(synk): let the attention consumer accept the lane-padded layout
        # so this full read+write slice can be dropped from the hot path.
        y = y[:, :out_features]
    return y.reshape(*head_shape, out_features)


def prepare_for_mha(x, weight, bias, heads: int, d_k: int):
    """Matches PrepareForMultiHeadAttention.forward.

    x:      [..., d_model]
    weight: [heads*d_k, d_model]  (PyTorch nn.Linear layout)
    bias:   [heads*d_k] or None
    returns [..., heads, d_k]

    For repeated calls, hoist pack_mha_params() to parameter-setup time and
    call mha_linear_packed() directly.
    """
    w_t, b2d, out_features = pack_mha_params(weight, bias)
    assert out_features == heads * d_k
    y = mha_linear_packed(x, w_t, b2d, out_features)
    return y.reshape(*x.shape[:-1], heads, d_k)


def init_linear_params(key, d_model: int, heads: int, d_k: int, use_bias: bool):
    """Deterministic init matching nn.Linear default (kaiming-uniform style)."""
    out_features = heads * d_k
    kw, kb = jax.random.split(key)
    bound = 1.0 / math.sqrt(d_model)
    weight = jax.random.uniform(kw, (out_features, d_model), jnp.float32, -bound, bound)
    bias = None
    if use_bias:
        bias = jax.random.uniform(kb, (out_features,), jnp.float32, -bound, bound)
    return weight, bias


if __name__ == "__main__":
    key = jax.random.PRNGKey(0)
    kx, kp, kp2, kx3, kp3 = jax.random.split(key, 5)

    # Case 1: bias, out_features is a multiple of 128 (no pad/slice), single K step.
    seq, batch = 8, 2
    d_model, heads, d_k = 64, 4, 32               # heads*d_k = 128
    x = jax.random.normal(kx, (seq, batch, d_model), jnp.float32)
    weight, bias = init_linear_params(kp, d_model, heads, d_k, use_bias=True)

    out = jax.block_until_ready(prepare_for_mha(x, weight, bias, heads, d_k))
    ref = (np.asarray(x, np.float64).reshape(-1, d_model)
           @ np.asarray(weight, np.float64).T + np.asarray(bias, np.float64))
    ref = ref.reshape(seq, batch, heads, d_k)
    assert out.shape == (seq, batch, heads, d_k)
    assert np.allclose(np.asarray(out, np.float64), ref, atol=1e-4, rtol=1e-4)

    # Case 2: no bias, out_features not a multiple of 128 (pad + slice path).
    heads2, d_k2 = 3, 16                          # heads*d_k = 48 -> padded to 128
    weight2, _ = init_linear_params(kp2, d_model, heads2, d_k2, use_bias=False)
    out2 = jax.block_until_ready(prepare_for_mha(x, weight2, None, heads2, d_k2))
    ref2 = (np.asarray(x, np.float64).reshape(-1, d_model)
            @ np.asarray(weight2, np.float64).T).reshape(seq, batch, heads2, d_k2)
    assert out2.shape == (seq, batch, heads2, d_k2)
    assert np.allclose(np.asarray(out2, np.float64), ref2, atol=1e-4, rtol=1e-4)

    # Case 3: exercise the K-reduction (accumulator) path + hoisted param packing.
    d_model3, heads3, d_k3 = 256, 2, 64           # heads*d_k = 128
    x3 = jax.random.normal(kx3, (seq, batch, d_model3), jnp.float32)
    weight3, bias3 = init_linear_params(kp3, d_model3, heads3, d_k3, use_bias=True)
    w_t3, b3, nf3 = pack_mha_params(weight3, bias3)            # hoisted packing
    y3 = mha_linear_packed(x3, w_t3, b3, nf3, tile_override=(16, 128))  # k_steps = 2
    out3 = jax.block_until_ready(y3.reshape(seq, batch, heads3, d_k3))
    ref3 = (np.asarray(x3, np.float64).reshape(-1, d_model3)
            @ np.asarray(weight3, np.float64).T + np.asarray(bias3, np.float64))
    ref3 = ref3.reshape(seq, batch, heads3, d_k3)
    assert out3.shape == (seq, batch, heads3, d_k3)
    assert np.allclose(np.asarray(out3, np.float64), ref3, atol=1e-4, rtol=1e-4)

    print("KERNEL_OK")
</pallas_src>

<mosaic_0001>
module attributes {stable_mosaic.version = 11 : i64} {
  func.func @_mha_linear_bias_kernel(%arg0: i32, %arg1: i32, %arg2: memref<16x64xf32, #tpu.memory_space<vmem>>, %arg3: memref<64x128xf32, #tpu.memory_space<vmem>>, %arg4: memref<1x128xf32, #tpu.memory_space<vmem>>, %arg5: memref<16x128xf32, #tpu.memory_space<vmem>>, %arg6: memref<16x128xf32, #tpu.memory_space<vmem>>) attributes {dimension_semantics = [#tpu.dimension_semantics<parallel>, #tpu.dimension_semantics<arbitrary>], iteration_bounds = array<i64: 1, 1>, scalar_prefetch = 0 : i64, scratch_operands = 1 : i64, tpu.core_type = #tpu.core_type<tc>, window_params = [{transform_indices = @transform_0, window_bounds = array<i64: 16, 64>}, {pipeline_mode = #tpu.pipeline_mode<synchronous>, transform_indices = @transform_1, window_bounds = array<i64: 64, 128>}, {pipeline_mode = #tpu.pipeline_mode<synchronous>, transform_indices = @transform_2, window_bounds = array<i64: 1, 128>}, {transform_indices = @transform_3, window_bounds = array<i64: 16, 128>}]} {
    %c0_i32 = arith.constant 0 : i32
    %0 = arith.cmpi eq, %arg1, %c0_i32 : i32
    %1 = arith.extui %0 : i1 to i32
    %c0_i32_0 = arith.constant 0 : i32
    %2 = arith.cmpi ne, %1, %c0_i32_0 : i32
    scf.if %2 {
      %cst_10 = arith.constant 0.000000e+00 : f32
      %12 = vector.broadcast %cst_10 : f32 to vector<16x128xf32>
      %c0_11 = arith.constant 0 : index
      %c0_12 = arith.constant 0 : index
      %13 = vector.load %arg6[%c0_11, %c0_12] : memref<16x128xf32, #tpu.memory_space<vmem>>, vector<16x128xf32>
      tpu.vector_store %arg6[%c0_11, %c0_12], %12 {strides = array<i32>} : memref<16x128xf32, #tpu.memory_space<vmem>>, vector<16x128xf32>,
    } else {
    }
    %c0 = arith.constant 0 : index
    %c0_1 = arith.constant 0 : index
    %3 = vector.load %arg6[%c0, %c0_1] : memref<16x128xf32, #tpu.memory_space<vmem>>, vector<16x128xf32>
    %c0_2 = arith.constant 0 : index
    %c0_3 = arith.constant 0 : index
    %4 = vector.load %arg2[%c0_2, %c0_3] : memref<16x64xf32, #tpu.memory_space<vmem>>, vector<16x64xf32>
    %c0_4 = arith.constant 0 : index
    %c0_5 = arith.constant 0 : index
    %5 = vector.load %arg3[%c0_4, %c0_5] : memref<64x128xf32, #tpu.memory_space<vmem>>, vector<64x128xf32>
    %cst = arith.constant dense<0.000000e+00> : vector<16x128xf32>
    %6 = tpu.matmul %4, %5, %cst {dimension_numbers = #tpu.dot_dimension_numbers<[1], [0], [0], [1], [0, 0, 1, 1], [], []>} : vector<16x64xf32>, vector<64x128xf32>, vector<16x128xf32> -> vector<16x128xf32>
    %7 = arith.addf %3, %6 : vector<16x128xf32>
    %c0_6 = arith.constant 0 : index
    %c0_7 = arith.constant 0 : index
    %8 = vector.load %arg6[%c0_6, %c0_7] : memref<16x128xf32, #tpu.memory_space<vmem>>, vector<16x128xf32>
    tpu.vector_store %arg6[%c0_6, %c0_7], %7 {strides = array<i32>} : memref<16x128xf32, #tpu.memory_space<vmem>>, vector<16x128xf32>,
    %c0_i32_8 = arith.constant 0 : i32
    %9 = arith.cmpi eq, %arg1, %c0_i32_8 : i32
    %10 = arith.extui %9 : i1 to i32
    %c0_i32_9 = arith.constant 0 : i32
    %11 = arith.cmpi ne, %10, %c0_i32_9 : i32
    scf.if %11 {
      %c0_10 = arith.constant 0 : index
      %c0_11 = arith.constant 0 : index
      %12 = vector.load %arg6[%c0_10, %c0_11] : memref<16x128xf32, #tpu.memory_space<vmem>>, vector<16x128xf32>
      %c0_12 = arith.constant 0 : index
      %c0_13 = arith.constant 0 : index
      %13 = vector.load %arg4[%c0_12, %c0_13] : memref<1x128xf32, #tpu.memory_space<vmem>>, vector<1x128xf32>
      %14 = vector.broadcast %13 : vector<1x128xf32> to vector<16x128xf32>
      %15 = arith.addf %12, %14 : vector<16x128xf32>
      %c0_14 = arith.constant 0 : index
      %c0_15 = arith.constant 0 : index
      %16 = vector.load %arg5[%c0_14, %c0_15] : memref<16x128xf32, #tpu.memory_space<vmem>>, vector<16x128xf32>
      tpu.vector_store %arg5[%c0_14, %c0_15], %15 {strides = array<i32>} : memref<16x128xf32, #tpu.memory_space<vmem>>, vector<16x128xf32>,
    } else {
    }
    return
  }
  func.func @transform_0(%arg0: i32, %arg1: i32) -> (i32, i32) {
    %c0_i32 = arith.constant 0 : i32
    return %arg0, %arg1 : i32, i32
  }
  func.func @transform_1(%arg0: i32, %arg1: i32) -> (i32, i32) {
    %c0_i32 = arith.constant 0 : i32
    %c0_i32_0 = arith.constant 0 : i32
    return %arg1, %c0_i32 : i32, i32
  }
  func.func @transform_2(%arg0: i32, %arg1: i32) -> (i32, i32) {
    %c0_i32 = arith.constant 0 : i32
    %c0_i32_0 = arith.constant 0 : i32
    %c0_i32_1 = arith.constant 0 : i32
    return %c0_i32, %c0_i32_0 : i32, i32
  }
  func.func @transform_3(%arg0: i32, %arg1: i32) -> (i32, i32) {
    %c0_i32 = arith.constant 0 : i32
    %c0_i32_0 = arith.constant 0 : i32
    return %arg0, %c0_i32 : i32, i32
  }
}

</mosaic_0001>

<bundles_post_ra>
// kernel: tpu_custom_call.1
= control target key start
LH: loop header
LB: loop body
LE: loop exit
PB: predicated region body
PF: predicated region fallthrough
CT: control target
= control target key end

     0   :  { %8 = vsyncpa [#allocation4], 0  ;;  %s332_s0 = inlined_call_operand.hbm [shape: f32[16,64], index: 0, kind: input, shape index: {}]   ;;  %s333_s1 = inlined_call_operand.hbm [shape: f32[64,128], index: 1, kind: input, shape index: {}]   ;;  %s334_s2 = inlined_call_operand.vmem [shape: f32[1,128], index: 2, kind: input, shape index: {}]   ;;  %s335_s3 = inlined_call_operand.hbm [shape: f32[16,128], index: 3, kind: output, shape index: {}]  }
   0x1   :  { %9 = vsyncpa [#allocation7], 0 }
   0x2   :  { %10 = vsyncpa [#allocation5], 0  ;;  %s284_s12 = smov [#allocation3]  }
   0x3   :  { %s16_s13 = sshll.u32 %s284_s12, 4  ;;  %s17_s13 = int_to_ptr.vmem [resolvable:$true] %s16_s13 }
   0x4   :  { %s226_s14 = scalar_lea.vmem %s17_s13, 256  ;;  %p231_p1 = scmp.lt.s32.totalorder %s17_s13, %s17_s13 }
   0x5   :  { %p227_p0 = scmp.ne.s32.totalorder %s17_s13, %s226_s14  ;;  %p232_p2 = scmp.lt.s32.totalorder %s226_s14, %s226_s14 }
   0x7   :  { %p233_p3 = por %p232_p2, %p231_p1 }
   0x9   :  { %p234_p4 = pnand %p233_p3, %p227_p0 }
   0xb   :  { %237 = shalt.err (!%p234_p4)
}
   0xc   :  { %s285_s15 = smov 128   ;;  %s286_s16 = smov 8  }
   0xd   :  { %22 = dma.hbm_to_vmem [thread:$0]  %s332_s0, 256, %s17_s13, [#allocation4], %s285_s15, %s285_s15, %s286_s16  }
   0xe   :  { %s287_s19 = smov [#allocation6]  }
   0xf   :  { %s28_s20 = sshll.u32 %s287_s19, 4  ;;  %s29_s20 = int_to_ptr.vmem [resolvable:$true] %s28_s20 }
  0x10   :  { %s246_s21 = scalar_lea.vmem %s29_s20, 1024  ;;  %p251_p6 = scmp.lt.s32.totalorder %s29_s20, %s29_s20 }
  0x11   :  { %p247_p5 = scmp.ne.s32.totalorder %s29_s20, %s246_s21  ;;  %p252_p7 = scmp.lt.s32.totalorder %s246_s21, %s246_s21 }
  0x13   :  { %p253_p8 = por %p252_p7, %p251_p6 }
  0x15   :  { %p254_p9 = pnand %p253_p8, %p247_p5 }
  0x17   :  { %257 = shalt.err (!%p254_p9)
}
  0x18   :  { %34 = dma.hbm_to_vmem [thread:$0]  %s333_s1, 1024, %s29_s20, [#allocation7], %s285_s15, %s285_s15, %s286_s16  }
  0x19   :  { %278 = dma.done.wait [#allocation4], 256  }
  0x1a   :  { %279 = vsyncadd [#allocation4], 4294967040 }
  0x1b   :  { %280 = dma.done.wait [#allocation7], 1024  }
  0x1c   :  { %281 = vsyncadd [#allocation7], 4294966272  ;;  %v60_v0 = vld [vmem:[#allocation6 + $0x38] sm:$0xff]  ;;  %v59_v1 = vld [vmem:[#allocation6 + $0x30] sm:$0xff]  ;;  %vm61_vm0 = vcmask 523264   ;;  %s288_s24 = smov [#allocation8]  }
  0x1d   :  { %194 = vmatprep.subr.mxu0 %v60_v0  ;;  %v58_v2 = vld [vmem:[#allocation6 + $0x28] sm:$0xff]  ;;  %v51_v3 = vld [vmem:[#allocation3] sm:$0xff]  ;;  %v57_v4 = vld [vmem:[#allocation6 + $0x20] sm:$0xff]  ;;  %s168_s25 = sshll.u32 %s288_s24, 4  ;;  %s169_s25 = int_to_ptr.vmem [resolvable:$true] %s168_s25 }
  0x1e   :  { %195 = vmatpush3.msra.mxu0 %v60_v0  ;;  %210 = vmatprep.mubr.msk.f32.mxu0 %vm61_vm0, %v51_v3  ;;  %v56_v5 = vld [vmem:[#allocation6 + $0x18] sm:$0xff]  ;;  %v55_v6 = vld [vmem:[#allocation6 + $0x10] sm:$0xff]  ;;  %v54_v7 = vld [vmem:[#allocation6 + $0x8] sm:$0xff]  ;;  %s258_s26 = scalar_lea.vmem %s169_s25, 256  ;;  %p263_p11 = scmp.lt.s32.totalorder %s169_s25, %s169_s25 }
  0x1f   :  { %196 = vmatprep.subr.mxu0 %v59_v1  ;;  %v53_v8 = vld [vmem:[#allocation6] sm:$0xff]  ;;  %v52_v9 = vld [vmem:[#allocation3 + $0x8] sm:$0xff]  ;;  %v183_v10 = vld [vmem:[%s334_s2] ss:$0 sm:$0xff]  ;;  %p259_p10 = scmp.ne.s32.totalorder %s169_s25, %s258_s26  ;;  %p264_p12 = scmp.lt.s32.totalorder %s258_s26, %s258_s26 }
  0x20   :  { %197 = vmatpush3.msra.mxu0 %v59_v1 }
  0x21   :  { %198 = vmatprep.subr.mxu0 %v58_v2  ;;  %p265_p13 = por %p264_p12, %p263_p11 }
  0x22   :  { %199 = vmatpush3.msra.mxu0 %v58_v2 }
  0x23   :  { %200 = vmatprep.subr.mxu0 %v57_v4  ;;  %p266_p0 = pnand %p265_p13, %p259_p10 }
  0x24   :  { %201 = vmatpush3.msra.mxu0 %v57_v4 }
  0x25   :  { %202 = vmatprep.subr.mxu0 %v56_v5 }
  0x26   :  { %203 = vmatpush3.msra.mxu0 %v56_v5 }
  0x27   :  { %204 = vmatprep.subr.mxu0 %v55_v6 }
  0x28   :  { %205 = vmatpush3.msra.mxu0 %v55_v6 }
  0x29   :  { %206 = vmatprep.subr.mxu0 %v54_v7 }
  0x2a   :  { %207 = vmatpush3.msra.mxu0 %v54_v7 }
  0x2b   :  { %208 = vmatprep.subr.mxu0 %v53_v8 }
  0x2c   :  { %209 = vmatpush3.msra.mxu0 %v53_v8 }
  0x2d   :  { %211 = vmatmul.mubr.msk.f32.vlgmr.msra.gmra.mxu0 %vm61_vm0, %v52_v9 }
  0xed   :  { %v212_v11 = vpop.f32.mrf.mxu0 }
  0xee   :  { %v160_v12 = vadd.f32 %v212_v11, %v183_v10 }
  0xef   :  { %v134_v13 = vpop.f32.mrf.mxu0 }
  0xf0   :  { %162 = vst [vmem:[#allocation8 + $0x8] sm:$0xff] %v160_v12  ;;  %v159_v14 = vadd.f32 %v183_v10, %v134_v13 }
  0xf2   :  { %161 = vst [vmem:[#allocation8] sm:$0xff] %v159_v14 }
  0xf3   :  { %269 = shalt.err (!%p266_p0)
}
  0xf4   :  { %174 = dma.vmem_to_hbm [thread:$0]  %s169_s25, 256, %s335_s3, [#allocation5], %s285_s15, %s285_s15, %s286_s16  }
  0xf5   :  { %282 = dma.done.wait [#allocation5], 256  }
  0xf6   :  { %283 = vsyncadd [#allocation5], 4294967040 }
  0xf7   :  { %178 = vsyncpa [#allocation4], 1 }
  0xf8   :  { %179 = vsyncpa [#allocation7], 1 }
  0xf9   :  { %180 = vsyncpa [#allocation5], 1 }

</bundles_post_ra>
